<compile_context>
chip_gen: v7x
topology: tpu7x:2x2x1
jax: 0.10.0
libtpu: 0.0.40
codegen_flags: <defaults>
</compile_context>

<pallas_src>
import functools

import jax
import jax.numpy as jnp
from jax.experimental import pallas as pl
from jax.experimental.pallas import tpu as pltpu


def _round_up(a, m):
    return ((a + m - 1) // m) * m


def _cdiv(a, b):
    return (a + b - 1) // b


def _mlp_softmax_kernel(num_layers, xT_ref, *refs):
    """Fused PTDeep forward for one batch tile, batch-in-lanes (transposed) layout.

    refs = (w0T, b0, w1T, b1, ..., w_{L-1}T, b_{L-1}, out)
      xT tile : (D, TILE_N)   f32  (cast to the matmul dtype in-kernel)
      wiT     : (H_out, H_in) bf16 (VMEM-resident across all grid steps)
      bi      : (H_out, 1)    f32
      out     : (C, TILE_N)   probs^T, lane-dense store
    """
    out_ref = refs[-1]
    param_refs = refs[:-1]
    assert len(param_refs) == 2 * num_layers

    mm_dtype = param_refs[0].dtype
    # bf16 cast on the VPU here, instead of a separate XLA pass over X in HBM.
    h = xT_ref[...].astype(mm_dtype)                       # (D, TILE_N)
    logits = None
    for i in range(num_layers):
        wT = param_refs[2 * i][...]                        # (H_out, H_in) bf16
        b = param_refs[2 * i + 1][...]                     # (H_out, 1)    f32
        z = jnp.dot(wT, h, preferred_element_type=jnp.float32) + b  # (H_out, TILE_N) f32
        if i < num_layers - 1:
            # ReLU in f32 (v5e VPU has no bf16 path), back to bf16 as the next MXU operand.
            h = jnp.maximum(z, 0.0).astype(mm_dtype)
        else:
            logits = z

    # Numerically-stable softmax over the class axis (sublane axis 0), in f32.
    m = jnp.max(logits, axis=0, keepdims=True)             # (1, TILE_N)
    e = jnp.exp(logits - m)
    denom = jnp.sum(e, axis=0, keepdims=True)
    # approx=False keeps columns exactly normalized (get_loss takes log(probs)).
    out_ref[...] = (e * pl.reciprocal(denom, approx=False)).astype(out_ref.dtype)


def pt_deep_forward(x, weights, biases, *, tile_n=4096,
                    matmul_dtype=jnp.bfloat16, out_dtype=jnp.float32):
    """PTDeep forward pass (returns self.probs, shape (N, C)) as one Pallas kernel.

    x:       (N, D) float32
    weights: list of (D_i, D_{i+1}) float32
    biases:  list of (D_{i+1},) float32
    out_dtype: jnp.bfloat16 halves output writeback if the consumer tolerates it.
    """
    num_layers = len(weights)
    n, d = x.shape
    c = weights[-1].shape[1]

    # ---- batch tiling: batch lives in the *lane* dimension -------------------
    if n <= tile_n:
        # Single full-extent block: no padding at all (block shape == array dims).
        tn, n_pad, num_steps = n, n, 1
    else:
        n_pad = _round_up(n, 128)                  # bounded pad (<128 cols), lanes stay dense
        # >= 2 grid steps so v7x's two TensorCores both get work on the "parallel" axis.
        num_steps = max(2, _cdiv(n_pad, tile_n))
        tn = _round_up(_cdiv(n_pad, num_steps), 128)
        num_steps = _cdiv(n_pad, tn)
        n_pad = num_steps * tn                     # total padding < num_steps*128 (~3% of N)

    # Layout plumbing: present X batch-in-lanes.  Kept f32 (bf16 cast is in-kernel).
    xT = jnp.transpose(x)                          # (D, N)
    if n_pad != n:
        xT = jnp.pad(xT, ((0, 0), (0, n_pad - n)))  # tail columns only; fused by XLA

    # Params: transposed weights (tiny) in the matmul dtype, biases as (H, 1) f32.
    # TODO(synk): on v7x an fp8 (e4m3) matmul_dtype for X/W would halve the X stream;
    # kept bf16 here for portability to v5e/v6e.
    params = []
    for w, b in zip(weights, biases):
        params.append(jnp.transpose(w).astype(matmul_dtype))   # (H_out, H_in)
        params.append(b.reshape(-1, 1).astype(jnp.float32))    # (H_out, 1)

    # ---- BlockSpecs: x/out tiled over batch (lanes), params fully VMEM-resident.
    x_spec = pl.BlockSpec((d, tn), lambda i: (0, i))
    param_specs = []
    for w, b in zip(weights, biases):
        param_specs.append(pl.BlockSpec((w.shape[1], w.shape[0]), lambda i: (0, 0)))
        param_specs.append(pl.BlockSpec((b.shape[0], 1), lambda i: (0, 0)))
    out_spec = pl.BlockSpec((c, tn), lambda i: (0, i))          # lane-dense, unmasked stores

    flops = 2 * n_pad * sum(w.shape[0] * w.shape[1] for w in weights)
    transcendentals = n_pad * c + n_pad            # exp per logit + reciprocal per column
    bytes_accessed = (
        xT.size * xT.dtype.itemsize
        + sum(p.size * p.dtype.itemsize for p in params)
        + n_pad * c * jnp.dtype(out_dtype).itemsize
    )

    out = pl.pallas_call(
        functools.partial(_mlp_softmax_kernel, num_layers),
        out_shape=jax.ShapeDtypeStruct((c, n_pad), out_dtype),
        grid=(num_steps,),
        in_specs=[x_spec] + param_specs,
        out_specs=out_spec,
        compiler_params=pltpu.CompilerParams(
            dimension_semantics=("parallel",),      # v7x: both TCs share the batch grid
            vmem_limit_bytes=32 * 1024 * 1024,      # tiles use ~3 MiB; headroom on v7x (64 MiB)
        ),
        cost_estimate=pl.CostEstimate(
            flops=flops,
            transcendentals=transcendentals,
            bytes_accessed=bytes_accessed,
        ),
    )(xT, *params)

    # Back to the PyTorch layout (N, C); slicing drops any padded tail columns.
    return jnp.transpose(out[:, :n])


def _reference_forward(x, weights, biases):
    h = x
    for i, (w, b) in enumerate(zip(weights, biases)):
        z = h @ w + b
        h = jnp.maximum(z, 0.0) if i < len(weights) - 1 else z
    return jax.nn.softmax(h, axis=-1)


if __name__ == "__main__":
    # PTDeep(conf=[16, 32, 32, 10], activation_f=relu)
    # TODO(synk): activation_f is assumed to be ReLU (the lab default); other
    # activations would swap the jnp.maximum in the kernel.
    # TODO(synk): get_loss / count_params are training/introspection utilities,
    # not part of the forward hot path; only forward() is implemented here.
    conf = [16, 32, 32, 10]

    key = jax.random.PRNGKey(0)
    keys = jax.random.split(key, len(conf) + 1)

    weights, biases = [], []
    for i in range(len(conf) - 1):
        w = 0.01 * jax.random.normal(keys[i], (conf[i], conf[i + 1]), jnp.float32)
        b = jnp.zeros((conf[i + 1],), jnp.float32)
        weights.append(w)
        biases.append(b)

    # Small batch: single full-extent block (grid = 1), no padding.
    x_small = jax.random.normal(keys[-2], (8, conf[0]), jnp.float32)
    probs = jax.block_until_ready(pt_deep_forward(x_small, weights, biases))
    ref = _reference_forward(x_small, weights, biases)
    assert probs.shape == (8, conf[-1])
    assert jnp.allclose(probs, ref, atol=2e-3, rtol=0.0), float(jnp.max(jnp.abs(probs - ref)))
    assert jnp.allclose(jnp.sum(probs, axis=-1), 1.0, atol=1e-4)

    # Ragged batch exercising the multi-step tiled + bounded-tail-pad path.
    x_big = jax.random.normal(keys[-1], (300, conf[0]), jnp.float32)
    probs_big = jax.block_until_ready(
        pt_deep_forward(x_big, weights, biases, tile_n=128))
    ref_big = _reference_forward(x_big, weights, biases)
    assert probs_big.shape == (300, conf[-1])
    assert jnp.allclose(probs_big, ref_big, atol=2e-3, rtol=0.0), \
        float(jnp.max(jnp.abs(probs_big - ref_big)))
    assert jnp.allclose(jnp.sum(probs_big, axis=-1), 1.0, atol=1e-4)

    print("KERNEL_OK")
</pallas_src>

<mosaic_0001>
module attributes {stable_mosaic.version = 11 : i64} {
  func.func @_mlp_softmax_kernel(%arg0: i32, %arg1: memref<16x8xf32, #tpu.memory_space<vmem>>, %arg2: memref<32x16xbf16, #tpu.memory_space<vmem>>, %arg3: memref<32x1xf32, #tpu.memory_space<vmem>>, %arg4: memref<32x32xbf16, #tpu.memory_space<vmem>>, %arg5: memref<32x1xf32, #tpu.memory_space<vmem>>, %arg6: memref<10x32xbf16, #tpu.memory_space<vmem>>, %arg7: memref<10x1xf32, #tpu.memory_space<vmem>>, %arg8: memref<10x8xf32, #tpu.memory_space<vmem>>) attributes {dimension_semantics = [#tpu.dimension_semantics<parallel>], iteration_bounds = array<i64: 1>, scalar_prefetch = 0 : i64, scratch_operands = 0 : i64, tpu.core_type = #tpu.core_type<tc>, window_params = [{transform_indices = @transform_0, window_bounds = array<i64: 16, 8>}, {pipeline_mode = #tpu.pipeline_mode<synchronous>, transform_indices = @transform_1, window_bounds = array<i64: 32, 16>}, {pipeline_mode = #tpu.pipeline_mode<synchronous>, transform_indices = @transform_2, window_bounds = array<i64: 32, 1>}, {pipeline_mode = #tpu.pipeline_mode<synchronous>, transform_indices = @transform_3, window_bounds = array<i64: 32, 32>}, {pipeline_mode = #tpu.pipeline_mode<synchronous>, transform_indices = @transform_4, window_bounds = array<i64: 32, 1>}, {pipeline_mode = #tpu.pipeline_mode<synchronous>, transform_indices = @transform_5, window_bounds = array<i64: 10, 32>}, {pipeline_mode = #tpu.pipeline_mode<synchronous>, transform_indices = @transform_6, window_bounds = array<i64: 10, 1>}, {transform_indices = @transform_7, window_bounds = array<i64: 10, 8>}]} {
    %c0 = arith.constant 0 : index
    %c0_0 = arith.constant 0 : index
    %0 = vector.load %arg1[%c0, %c0_0] : memref<16x8xf32, #tpu.memory_space<vmem>>, vector<16x8xf32>
    %1 = arith.truncf %0 : vector<16x8xf32> to vector<16x8xbf16>
    %c0_1 = arith.constant 0 : index
    %c0_2 = arith.constant 0 : index
    %2 = vector.load %arg2[%c0_1, %c0_2] : memref<32x16xbf16, #tpu.memory_space<vmem>>, vector<32x16xbf16>
    %c0_3 = arith.constant 0 : index
    %c0_4 = arith.constant 0 : index
    %3 = vector.load %arg3[%c0_3, %c0_4] : memref<32x1xf32, #tpu.memory_space<vmem>>, vector<32x1xf32>
    %cst = arith.constant dense<0.000000e+00> : vector<32x8xf32>
    %4 = tpu.matmul %2, %1, %cst {dimension_numbers = #tpu.dot_dimension_numbers<[1], [0], [0], [1], [0, 0, 1, 1], [], []>} : vector<32x16xbf16>, vector<16x8xbf16>, vector<32x8xf32> -> vector<32x8xf32>
    %5 = vector.broadcast %3 : vector<32x1xf32> to vector<32x8xf32>
    %6 = arith.addf %4, %5 : vector<32x8xf32>
    %cst_5 = arith.constant 0.000000e+00 : f32
    %7 = vector.broadcast %cst_5 : f32 to vector<32x8xf32>
    %8 = arith.maximumf %6, %7 : vector<32x8xf32>
    %9 = arith.truncf %8 : vector<32x8xf32> to vector<32x8xbf16>
    %c0_6 = arith.constant 0 : index
    %c0_7 = arith.constant 0 : index
    %10 = vector.load %arg4[%c0_6, %c0_7] : memref<32x32xbf16, #tpu.memory_space<vmem>>, vector<32x32xbf16>
    %c0_8 = arith.constant 0 : index
    %c0_9 = arith.constant 0 : index
    %11 = vector.load %arg5[%c0_8, %c0_9] : memref<32x1xf32, #tpu.memory_space<vmem>>, vector<32x1xf32>
    %cst_10 = arith.constant dense<0.000000e+00> : vector<32x8xf32>
    %12 = tpu.matmul %10, %9, %cst_10 {dimension_numbers = #tpu.dot_dimension_numbers<[1], [0], [0], [1], [0, 0, 1, 1], [], []>} : vector<32x32xbf16>, vector<32x8xbf16>, vector<32x8xf32> -> vector<32x8xf32>
    %13 = vector.broadcast %11 : vector<32x1xf32> to vector<32x8xf32>
    %14 = arith.addf %12, %13 : vector<32x8xf32>
    %cst_11 = arith.constant 0.000000e+00 : f32
    %15 = vector.broadcast %cst_11 : f32 to vector<32x8xf32>
    %16 = arith.maximumf %14, %15 : vector<32x8xf32>
    %17 = arith.truncf %16 : vector<32x8xf32> to vector<32x8xbf16>
    %c0_12 = arith.constant 0 : index
    %c0_13 = arith.constant 0 : index
    %18 = vector.load %arg6[%c0_12, %c0_13] : memref<10x32xbf16, #tpu.memory_space<vmem>>, vector<10x32xbf16>
    %c0_14 = arith.constant 0 : index
    %c0_15 = arith.constant 0 : index
    %19 = vector.load %arg7[%c0_14, %c0_15] : memref<10x1xf32, #tpu.memory_space<vmem>>, vector<10x1xf32>
    %cst_16 = arith.constant dense<0.000000e+00> : vector<10x8xf32>
    %20 = tpu.matmul %18, %17, %cst_16 {dimension_numbers = #tpu.dot_dimension_numbers<[1], [0], [0], [1], [0, 0, 1, 1], [], []>} : vector<10x32xbf16>, vector<32x8xbf16>, vector<10x8xf32> -> vector<10x8xf32>
    %21 = vector.broadcast %19 : vector<10x1xf32> to vector<10x8xf32>
    %22 = arith.addf %20, %21 : vector<10x8xf32>
    %cst_17 = arith.constant dense<0xFF800000> : vector<8xf32>
    %23 = vector.multi_reduction <maximumf>, %22, %cst_17 [0] : vector<10x8xf32> to vector<8xf32>
    %24 = vector.shape_cast %23 : vector<8xf32> to vector<1x8xf32>
    %25 = vector.broadcast %24 : vector<1x8xf32> to vector<10x8xf32>
    %26 = arith.subf %22, %25 : vector<10x8xf32>
    %27 = math.exp %26 : vector<10x8xf32>
    %cst_18 = arith.constant dense<0.000000e+00> : vector<8xf32>
    %28 = vector.multi_reduction <add>, %27, %cst_18 [0] : vector<10x8xf32> to vector<8xf32>
    %29 = vector.shape_cast %28 : vector<8xf32> to vector<1x8xf32>
    %30 = tpu.reciprocal %29 : vector<1x8xf32> -> vector<1x8xf32>
    %31 = vector.broadcast %30 : vector<1x8xf32> to vector<10x8xf32>
    %32 = arith.mulf %27, %31 : vector<10x8xf32>
    %c0_19 = arith.constant 0 : index
    %c0_20 = arith.constant 0 : index
    %33 = vector.load %arg8[%c0_19, %c0_20] : memref<10x8xf32, #tpu.memory_space<vmem>>, vector<10x8xf32>
    tpu.vector_store %arg8[%c0_19, %c0_20], %32 {strides = array<i32>} : memref<10x8xf32, #tpu.memory_space<vmem>>, vector<10x8xf32>,
    return
  }
  func.func @transform_0(%arg0: i32) -> (i32, i32) {
    %c0_i32 = arith.constant 0 : i32
    %c0_i32_0 = arith.constant 0 : i32
    return %c0_i32, %arg0 : i32, i32
  }
  func.func @transform_1(%arg0: i32) -> (i32, i32) {
    %c0_i32 = arith.constant 0 : i32
    %c0_i32_0 = arith.constant 0 : i32
    %c0_i32_1 = arith.constant 0 : i32
    return %c0_i32, %c0_i32_0 : i32, i32
  }
  func.func @transform_2(%arg0: i32) -> (i32, i32) {
    %c0_i32 = arith.constant 0 : i32
    %c0_i32_0 = arith.constant 0 : i32
    %c0_i32_1 = arith.constant 0 : i32
    return %c0_i32, %c0_i32_0 : i32, i32
  }
  func.func @transform_3(%arg0: i32) -> (i32, i32) {
    %c0_i32 = arith.constant 0 : i32
    %c0_i32_0 = arith.constant 0 : i32
    %c0_i32_1 = arith.constant 0 : i32
    return %c0_i32, %c0_i32_0 : i32, i32
  }
  func.func @transform_4(%arg0: i32) -> (i32, i32) {
    %c0_i32 = arith.constant 0 : i32
    %c0_i32_0 = arith.constant 0 : i32
    %c0_i32_1 = arith.constant 0 : i32
    return %c0_i32, %c0_i32_0 : i32, i32
  }
  func.func @transform_5(%arg0: i32) -> (i32, i32) {
    %c0_i32 = arith.constant 0 : i32
    %c0_i32_0 = arith.constant 0 : i32
    %c0_i32_1 = arith.constant 0 : i32
    return %c0_i32, %c0_i32_0 : i32, i32
  }
  func.func @transform_6(%arg0: i32) -> (i32, i32) {
    %c0_i32 = arith.constant 0 : i32
    %c0_i32_0 = arith.constant 0 : i32
    %c0_i32_1 = arith.constant 0 : i32
    return %c0_i32, %c0_i32_0 : i32, i32
  }
  func.func @transform_7(%arg0: i32) -> (i32, i32) {
    %c0_i32 = arith.constant 0 : i32
    %c0_i32_0 = arith.constant 0 : i32
    return %c0_i32, %arg0 : i32, i32
  }
}

</mosaic_0001>

<bundles_post_ra>
// kernel: tpu_custom_call.1
= control target key start
LH: loop header
LB: loop body
LE: loop exit
PB: predicated region body
PF: predicated region fallthrough
CT: control target
= control target key end

     0   :  { %vm68_vm0 = vcmask 130048   ;;  %v386_v2 = vmov 0   ;;  %vm168_vm1 = vcmask 261120   ;;  %v387_v36 = vmov 0.0   ;;  %s497_s0 = inlined_call_operand.vmem [shape: f32[16,8], index: 0, kind: input, shape index: {}]   ;;  %s498_s1 = inlined_call_operand.vmem [shape: bf16[32,16], index: 1, kind: input, shape index: {}]   ;;  %s499_s2 = inlined_call_operand.vmem [shape: f32[32,1], index: 2, kind: input, shape index: {}]   ;;  %s500_s4 = inlined_call_operand.vmem [shape: f32[32,1], index: 4, kind: input, shape index: {}]   ;;  %s501_s6 = inlined_call_operand.vmem [shape: f32[10,1], index: 6, kind: input, shape index: {}]   ;;  %s502_s3 = inlined_call_operand.vmem [shape: bf16[32,32], index: 3, kind: input, shape index: {}]   ;;  %s503_s5 = inlined_call_operand.vmem [shape: bf16[10,32], index: 5, kind: input, shape index: {}]   ;;  %s504_s7 = inlined_call_operand.vmem [shape: f32[10,8], index: 7, kind: output, shape index: {}]  }
   0x1   :  { %v27_v0 = vld [vmem:[%s497_s0] sm:$0xff]  ;;  %v28_v1 = vld [vmem:[%s497_s0 + $0x8] sm:$0xff]  ;;  %373 = vset.pattern.permute.xlu0 %v386_v2  ;;  %374 = vset.pattern.permute.xlu1 %v386_v2  ;;  %v36_v7 = vld [vmem:[%s499_s2 + $0x10] sm:$0xff]  ;;  %vm388_vm2 = vmmov 0   ;;  %vm293_vm3 = vcmask 64512   ;;  %vm295_vm4 = vcmask 58368  }
   0x2   :  { %v29_v3 = vpack.c.bf16 %v28_v1, %v27_v0  ;;  %v375_v4 = vld [vmem:[%s498_s1] sm:$0xff]   ;;  %v376_v6 = vld [vmem:[%s498_s1 + $0x8] sm:$0xff]   ;;  %50 = vperm.xlu1 %374, %v36_v7   ;;  %v37_v9 = vld [vmem:[%s499_s2 + $0x18] sm:$0xff] }
   0x3   :  { %v34_v5 = vld [vmem:[%s499_s2] sm:$0xff]  ;;  %350 = vmatprep.mubr.msk.bf16.mxu0 %vm68_vm0, %v375_v4  ;;  %v35_v8 = vld [vmem:[%s499_s2 + $0x8] sm:$0xff]  ;;  %v136_v12 = vld [vmem:[%s500_s4 + $0x10] sm:$0xff] }
   0x4   :  { %348 = vmatprep.subr.bf16.mxu0 %v29_v3  ;;  %40 = vperm.xlu0 %373, %v34_v5   ;;  %v134_v10 = vld [vmem:[%s500_s4] sm:$0xff]  ;;  %v135_v11 = vld [vmem:[%s500_s4 + $0x8] sm:$0xff]  ;;  %v137_v13 = vld [vmem:[%s500_s4 + $0x18] sm:$0xff] }
   0x5   :  { %349 = vmatpush3.bf16.msra.mxu0 %v29_v3  ;;  %v232_v14 = vld [vmem:[%s501_s6] sm:$0xff]  ;;  %v233_v15 = vld [vmem:[%s501_s6 + $0x8] sm:$0x3] }
   0x6   :  { %55 = vperm.xlu1 %374, %v37_v9   ;;  %v377_v16 = vld [vmem:[%s502_s3] sm:$0xff]   ;;  %v378_v35 = vld [vmem:[%s502_s3 + $0x8] sm:$0xff]   ;;  %362 = vmatprep.subr.bf16.mxu0 %v387_v36 }
   0x7   :  { %358 = vmatprep.mubr.msk.bf16.mxu1 %vm168_vm1, %v377_v16  ;;  %v379_v55 = vld [vmem:[%s503_s5] sm:$0x1f]  }
   0x8   :  { %351 = vmatmul.mubr.msk.bf16.vlgmr.msra.gmra.mrb[0].mxu0 %vm68_vm0, %v376_v6  ;;  %45 = vperm.xlu0 %373, %v35_v8  }
   0x9   :  { %366 = vmatprep.mubr.msk.bf16.mxu0 %vm388_vm2, %v387_v36 }
   0xa   :  { %145 = vperm.xlu1 %374, %v135_v11  }
   0xc   :  { %140 = vperm.xlu0 %373, %v134_v10  }
   0xe   :  { %155 = vperm.xlu1 %374, %v137_v13  }
  0x10   :  { %150 = vperm.xlu0 %373, %v136_v12  }
  0x12   :  { %241 = vperm.xlu1 %374, %v233_v15  }
  0x14   :  { %236 = vperm.xlu0 %373, %v232_v14  }
  0x81   :  { %v51_v17 = vpop.permute.xlu1 %50 }
  0x83   :  { %v41_v18 = vpop.permute.xlu0 %40 }
  0x85   :  { %v56_v22 = vpop.permute.xlu1 %55 }
  0x87   :  { %v46_v25 = vpop.permute.xlu0 %45 }
  0x89   :  { %v146_v38 = vpop.permute.xlu1 %145 }
  0x8b   :  { %v141_v37 = vpop.permute.xlu0 %140 }
  0x8d   :  { %v156_v43 = vpop.permute.xlu1 %155 }
  0x8f   :  { %v151_v39 = vpop.permute.xlu0 %150 }
  0x91   :  { %v242_v60 = vpop.permute.xlu1 %241 }
  0x93   :  { %v237_v56 = vpop.permute.xlu0 %236 }
  0xdb   :  { %v352_v19 = vpop.f32.mrb[0].mxu0 }
  0xdc   :  { %v118_v20 = vadd.f32 %v352_v19, %v51_v17  ;;  %v109_v21 = vpop.f32.mrb[1].mxu0 }
  0xdd   :  { %v110_v23 = vadd.f32 %v109_v21, %v41_v18  ;;  %v353_v24 = vpop.f32.mrb[2].mxu0 }
  0xde   :  { %v121_v26 = vadd.f32 %v353_v24, %v56_v22  ;;  %v112_v27 = vpop.f32.mrb[3].mxu0  ;;  %v126_v29 = vmax.f32 %v118_v20, 0.0 }
  0xdf   :  { %v113_v28 = vadd.f32 %v112_v27, %v46_v25  ;;  %v124_v31 = vmax.f32 %v110_v23, 0.0 }
  0xe0   :  { %v127_v30 = vmax.f32 %v121_v26, 0.0 }
  0xe1   :  { %v125_v32 = vmax.f32 %v113_v28, 0.0 }
  0xe2   :  { %v129_v33 = vpack.c.bf16 %v127_v30, %v126_v29 }
  0xe3   :  { %v128_v34 = vpack.c.bf16 %v125_v32, %v124_v31 }
  0xe5   :  { %354 = vmatprep.subr.bf16.mxu1 %v128_v34 }
  0xe6   :  { %355 = vmatpush3.bf16.msra.mxu1 %v128_v34 }
  0xe7   :  { %356 = vmatprep.subr.bf16.mxu1 %v129_v33 }
  0xea   :  { %357 = vmatpush3.bf16.msra.mxu1 %v129_v33 }
  0xed   :  { %359 = vmatmul.mubr.msk.bf16.vlgmr.msra.gmra.mrb[0].mxu1 %vm168_vm1, %v378_v35 }
 0x1c0   :  { %v360_v40 = vpop.f32.mrb[0].mxu1 }
 0x1c1   :  { %v218_v41 = vadd.f32 %v360_v40, %v151_v39  ;;  %v209_v42 = vpop.f32.mrb[1].mxu1 }
 0x1c2   :  { %v210_v44 = vadd.f32 %v209_v42, %v141_v37  ;;  %v361_v45 = vpop.f32.mrb[2].mxu1 }
 0x1c3   :  { %v221_v46 = vadd.f32 %v361_v45, %v156_v43  ;;  %v212_v47 = vpop.f32.mrb[3].mxu1  ;;  %v226_v49 = vmax.f32 %v218_v41, 0.0 }
 0x1c4   :  { %v213_v48 = vadd.f32 %v212_v47, %v146_v38  ;;  %v224_v51 = vmax.f32 %v210_v44, 0.0 }
 0x1c5   :  { %v227_v50 = vmax.f32 %v221_v46, 0.0 }
 0x1c6   :  { %v225_v52 = vmax.f32 %v213_v48, 0.0 }
 0x1c7   :  { %v229_v53 = vpack.c.bf16 %v227_v50, %v226_v49 }
 0x1c8   :  { %v228_v54 = vpack.c.bf16 %v225_v52, %v224_v51 }
 0x1ca   :  { %363 = vmatpush3.bf16.msra.mxu0 %v228_v54 }
 0x1cb   :  { %364 = vmatprep.subr.bf16.mxu0 %v387_v36 }
 0x1ce   :  { %365 = vmatpush3.bf16.msra.mxu0 %v229_v53 }
 0x1d1   :  { %367 = vmatmul.mubr.msk.bf16.vlgmr.msra.gmra.mrb[4].mxu0 %vm168_vm1, %v379_v55 }
 0x2a4   :  { %v286_v57 = vpop.f32.mrb[4].mxu0 }
 0x2a5   :  { %v287_v58 = vadd.f32 %v286_v57, %v237_v56  ;;  %v368_v59 = vpop.f32.mrb[5].mxu0 }
 0x2a6   :  { %v289_v61 = vpop.f32.mrb[6].mxu0 }
 0x2a7   :  { %v290_v62 = vadd.f32 %v289_v61, %v242_v60  ;;  %v369_v63 = vpop.f32.mrb[7].mxu0  ;;  %v294_v0 = vsel %vm293_vm3, %v287_v58, -inf }
 0x2a9   :  { %v296_v1 = vsel %vm295_vm4, %v290_v62, -inf }
 0x2aa   :  { %v297_v2 = vmax.f32 %v294_v0, %v296_v1 }
 0x2ac   :  { %v298_v3 = vrot.slane %v297_v2, 4 }
 0x2ae   :  { %v299_v4 = vmax.f32 %v297_v2, %v298_v3 }
 0x2b0   :  { %v300_v5 = vrot.slane %v299_v4, 2 }
 0x2b2   :  { %v301_v6 = vmax.f32 %v299_v4, %v300_v5 }
 0x2b4   :  { %v302_v7 = vrot.slane %v301_v6, 1 }
 0x2b6   :  { %v303_v8 = vmax.f32 %v301_v6, %v302_v7 }
 0x2b8   :  { %v304_v9 = vsub.f32 %v287_v58, %v303_v8  ;;  %v305_v10 = vsub.f32 %v290_v62, %v303_v8 }
 0x2ba   :  { %v306_v11 = vmul.f32 1.442695, %v304_v9  ;;  %v308_v12 = vmul.f32 1.442695, %v305_v10 }
 0x2bc   :  { %380 = vpow2.f32 %v306_v11 }
 0x2bd   :  { %382 = vpow2.f32 %v308_v12 }
 0x2c6   :  { %v381_v13 = vpop.eup %380 }
 0x2c7   :  { %v383_v14 = vpop.eup %382  ;;  %v310_v15 = vsel %vm293_vm3, %v381_v13, 0.0 }
 0x2c8   :  { %v311_v16 = vsel %vm295_vm4, %v383_v14, 0.0 }
 0x2c9   :  { %v312_v17 = vadd.f32 %v311_v16, %v310_v15 }
 0x2cb   :  { %v313_v18 = vrot.slane %v312_v17, 4 }
 0x2cd   :  { %v314_v19 = vadd.f32 %v313_v18, %v312_v17 }
 0x2cf   :  { %v315_v20 = vrot.slane %v314_v19, 2 }
 0x2d1   :  { %v316_v21 = vadd.f32 %v315_v20, %v314_v19 }
 0x2d3   :  { %v317_v22 = vrot.slane %v316_v21, 1 }
 0x2d5   :  { %v318_v23 = vadd.f32 %v317_v22, %v316_v21 }
 0x2d7   :  { %384 = vrcp.f32 %v318_v23 }
 0x2e1   :  { %v385_v24 = vpop.eup %384 }
 0x2e2   :  { %v320_v25 = vmul.f32 %v385_v24, %v381_v13  ;;  %v321_v26 = vmul.f32 %v385_v24, %v383_v14 }
 0x2e4   :  { %322 = vst.msk [vmem:[%s504_s7] sm:$0xff] %vm293_vm3, %v320_v25 }
 0x2e5   :  { %323 = vst.msk [vmem:[%s504_s7 + $0x8] sm:$0x3] %vm295_vm4, %v321_v26 }

</bundles_post_ra>
